<compile_context>
chip_gen: v5e
topology: v5e:2x2
jax: 0.10.0
libtpu: 0.0.40
codegen_flags: <defaults>
</compile_context>

<pallas_src>
import jax
import jax.numpy as jnp
from jax.experimental import pallas as pl
from jax.experimental.pallas import tpu as pltpu


def _round_up(x, m):
    return ((x + m - 1) // m) * m


def _decoder_step_kernel(tok_ref, emb_ref, h_ref, c_ref,
                         w_ref, b_ref, wfc_ref, bfc_ref,
                         pred_ref, hout_ref, cout_ref,
                         xh_ref):
    """One fused LSTM decode step: gather + LSTM cell + output projection.

    tok_ref:  (Bp,)          int32 token ids (SMEM)
    emb_ref:  (V, Ep)        embedding table (VMEM)
    h_ref:    (Bp, Hp)       previous hidden state
    c_ref:    (Bp, Hp)       previous cell state
    w_ref:    (Ep+Hp, 4*Hp)  fused [W_ih^T ; W_hh^T], gate g in lanes [g*Hp, g*Hp+H)
    b_ref:    (1, 4*Hp)      b_ih + b_hh, same per-gate lane layout
    wfc_ref:  (Hp, Op)       W_fc^T (zero-padded)
    bfc_ref:  (1, Op)        b_fc   (zero-padded)
    xh_ref:   (Bp, Ep+Hp)    scratch holding the fused [embedded_x, h] operand
    """
    Bp, Hp = h_ref.shape
    Ep = emb_ref.shape[1]

    # In-kernel embedding gather: one dynamic-row VMEM load per batch element.
    # (Dropout is identity in eval mode; training-mode dropout not modeled.)
    for b in range(Bp):
        idx = tok_ref[b]
        xh_ref[pl.ds(b, 1), 0:Ep] = emb_ref[pl.ds(idx, 1), :]
    # Recurrent input occupies the second (lane-aligned) block of the operand.
    xh_ref[:, Ep:Ep + Hp] = h_ref[...]

    # Single fused gate matmul: (Bp, Ep+Hp) @ (Ep+Hp, 4*Hp).
    gates = (jnp.dot(xh_ref[...], w_ref[...], preferred_element_type=jnp.float32)
             + b_ref[...])

    # PyTorch gate order i, f, g, o; each slice is 128-lane aligned (free).
    i_g = jax.nn.sigmoid(gates[:, 0 * Hp:1 * Hp])
    f_g = jax.nn.sigmoid(gates[:, 1 * Hp:2 * Hp])
    g_g = jnp.tanh(gates[:, 2 * Hp:3 * Hp])
    o_g = jax.nn.sigmoid(gates[:, 3 * Hp:4 * Hp])

    c_new = f_g * c_ref[...] + i_g * g_g
    h_new = o_g * jnp.tanh(c_new)

    pred_ref[...] = (jnp.dot(h_new, wfc_ref[...],
                             preferred_element_type=jnp.float32)
                     + bfc_ref[...])
    hout_ref[...] = h_new
    cout_ref[...] = c_new


def decoder_forward(x_tokens, hidden, cell, params):
    """Pallas-backed equivalent of Decoder.forward (eval mode, lstm, 1 layer).

    x_tokens: (B,) int32
    hidden:   (1, B, H) float32
    cell:     (1, B, H) float32
    returns:  predictions (B, O), hidden (1, B, H), cell (1, B, H)
    """
    emb_tab = params["embedding"].astype(jnp.float32)      # (V, E)
    V, E = emb_tab.shape
    H = params["w_hh"].shape[1]
    O = params["w_fc"].shape[0]
    B = x_tokens.shape[0]

    # Lane/sublane-aligned padded sizes.
    Ep, Hp, Op = _round_up(E, 128), _round_up(H, 128), _round_up(O, 128)
    Bp = _round_up(B, 8)

    # ---- host-side operand prep (zero-padded, lane-dense, fused weights) ----
    emb_p = jnp.pad(emb_tab, ((0, 0), (0, Ep - E)))

    w_ih_t = params["w_ih"].T.astype(jnp.float32)           # (E, 4H)
    w_hh_t = params["w_hh"].T.astype(jnp.float32)           # (H, 4H)
    b_sum = (params["b_ih"] + params["b_hh"]).astype(jnp.float32)   # (4H,)

    # Fused gate weight: rows [0:E] = W_ih^T, rows [Ep:Ep+H] = W_hh^T;
    # gate g occupies lanes [g*Hp : g*Hp+H], padded lanes are exactly zero.
    w_top = jnp.pad(w_ih_t.reshape(E, 4, H),
                    ((0, Ep - E), (0, 0), (0, Hp - H))).reshape(Ep, 4 * Hp)
    w_bot = jnp.pad(w_hh_t.reshape(H, 4, H),
                    ((0, Hp - H), (0, 0), (0, Hp - H))).reshape(Hp, 4 * Hp)
    w_cat = jnp.concatenate([w_top, w_bot], axis=0)          # (Ep+Hp, 4*Hp)
    b_cat = jnp.pad(b_sum.reshape(4, H),
                    ((0, 0), (0, Hp - H))).reshape(1, 4 * Hp)

    w_fc_p = jnp.pad(params["w_fc"].T.astype(jnp.float32),
                     ((0, Hp - H), (0, Op - O)))              # (Hp, Op)
    b_fc_p = jnp.pad(params["b_fc"].astype(jnp.float32),
                     (0, Op - O)).reshape(1, Op)

    tok_p = jnp.pad(x_tokens.astype(jnp.int32), (0, Bp - B))
    h_p = jnp.pad(hidden[0].astype(jnp.float32), ((0, Bp - B), (0, Hp - H)))
    c_p = jnp.pad(cell[0].astype(jnp.float32), ((0, Bp - B), (0, Hp - H)))

    vmem = pl.BlockSpec(memory_space=pltpu.MemorySpace.VMEM)
    smem = pl.BlockSpec(memory_space=pltpu.MemorySpace.SMEM)

    pred_p, h_new_p, c_new_p = pl.pallas_call(
        _decoder_step_kernel,
        out_shape=(
            jax.ShapeDtypeStruct((Bp, Op), jnp.float32),
            jax.ShapeDtypeStruct((Bp, Hp), jnp.float32),
            jax.ShapeDtypeStruct((Bp, Hp), jnp.float32),
        ),
        in_specs=[smem, vmem, vmem, vmem, vmem, vmem, vmem, vmem],
        out_specs=(vmem, vmem, vmem),
        scratch_shapes=[pltpu.VMEM((Bp, Ep + Hp), jnp.float32)],
        # h/c state is updated in place (recurrent state round-trip avoided).
        input_output_aliases={2: 1, 3: 2},
    )(tok_p, emb_p, h_p, c_p, w_cat, b_cat, w_fc_p, b_fc_p)

    predictions = pred_p[:B, :O]
    hidden_new = h_new_p[:B, :H][None, ...]
    cell_new = c_new_p[:B, :H][None, ...]
    return predictions, hidden_new, cell_new


def decoder_forward_ref(x_tokens, hidden, cell, params):
    """Pure-JAX reference of the same forward pass (for validation)."""
    emb = params["embedding"][x_tokens]                      # (B, E)
    h0, c0 = hidden[0], cell[0]
    gates = (emb @ params["w_ih"].T + h0 @ params["w_hh"].T
             + params["b_ih"] + params["b_hh"])
    H = h0.shape[-1]
    i_g = jax.nn.sigmoid(gates[:, 0 * H:1 * H])
    f_g = jax.nn.sigmoid(gates[:, 1 * H:2 * H])
    g_g = jnp.tanh(gates[:, 2 * H:3 * H])
    o_g = jax.nn.sigmoid(gates[:, 3 * H:4 * H])
    c1 = f_g * c0 + i_g * g_g
    h1 = o_g * jnp.tanh(c1)
    pred = h1 @ params["w_fc"].T + params["b_fc"]
    return pred, h1[None, ...], c1[None, ...]


def init_params(key, input_size, embedding_size, hidden_size, output_size):
    """Deterministic synthetic init mirroring PyTorch default shapes/inits."""
    k_emb, k1, k2, k3, k4, k5, k6 = jax.random.split(key, 7)
    bound = 1.0 / jnp.sqrt(hidden_size)
    u = lambda k, shape: jax.random.uniform(
        k, shape, minval=-bound, maxval=bound, dtype=jnp.float32)
    return {
        # nn.Embedding default: N(0, 1)
        "embedding": jax.random.normal(
            k_emb, (input_size, embedding_size), dtype=jnp.float32),
        # nn.LSTM params (single layer), PyTorch gate order i, f, g, o
        "w_ih": u(k1, (4 * hidden_size, embedding_size)),
        "w_hh": u(k2, (4 * hidden_size, hidden_size)),
        "b_ih": u(k3, (4 * hidden_size,)),
        "b_hh": u(k4, (4 * hidden_size,)),
        # nn.Linear(hidden_size, output_size)
        "w_fc": u(k5, (output_size, hidden_size)),
        "b_fc": u(k6, (output_size,)),
    }


if __name__ == "__main__":
    # Small shapes consistent with the module.
    input_size = 40        # vocab size for embedding
    embedding_size = 32
    hidden_size = 32
    output_size = 32       # target vocab size
    batch = 8

    key = jax.random.PRNGKey(0)
    k_p, k_x, k_h, k_c = jax.random.split(key, 4)

    params = init_params(k_p, input_size, embedding_size, hidden_size, output_size)

    x_tokens = jax.random.randint(k_x, (batch,), 0, input_size, dtype=jnp.int32)
    hidden = jax.random.normal(k_h, (1, batch, hidden_size), dtype=jnp.float32)
    cell = jax.random.normal(k_c, (1, batch, hidden_size), dtype=jnp.float32)

    predictions, hidden_new, cell_new = decoder_forward(x_tokens, hidden, cell, params)
    jax.block_until_ready((predictions, hidden_new, cell_new))

    assert predictions.shape == (batch, output_size)
    assert hidden_new.shape == (1, batch, hidden_size)
    assert cell_new.shape == (1, batch, hidden_size)

    # Validate against a pure-JAX reference (loose tolerance for MXU precision).
    p_ref, h_ref, c_ref = decoder_forward_ref(x_tokens, hidden, cell, params)
    assert jnp.allclose(predictions, p_ref, atol=1e-2, rtol=1e-2)
    assert jnp.allclose(hidden_new, h_ref, atol=1e-2, rtol=1e-2)
    assert jnp.allclose(cell_new, c_ref, atol=1e-2, rtol=1e-2)

    print("KERNEL_OK")
</pallas_src>

<mosaic_0001>
module attributes {stable_mosaic.version = 11 : i64} {
  func.func @_decoder_step_kernel(%arg0: memref<8xi32, #tpu.memory_space<smem>>, %arg1: memref<40x128xf32, #tpu.memory_space<vmem>>, %arg2: memref<8x128xf32, #tpu.memory_space<vmem>>, %arg3: memref<8x128xf32, #tpu.memory_space<vmem>>, %arg4: memref<256x512xf32, #tpu.memory_space<vmem>>, %arg5: memref<1x512xf32, #tpu.memory_space<vmem>>, %arg6: memref<128x128xf32, #tpu.memory_space<vmem>>, %arg7: memref<1x128xf32, #tpu.memory_space<vmem>>, %arg8: memref<8x128xf32, #tpu.memory_space<vmem>>, %arg9: memref<8x128xf32, #tpu.memory_space<vmem>>, %arg10: memref<8x128xf32, #tpu.memory_space<vmem>>, %arg11: memref<8x256xf32, #tpu.memory_space<vmem>>) attributes {dimension_semantics = [], scalar_prefetch = 0 : i64, scratch_operands = 1 : i64, tpu.core_type = #tpu.core_type<tc>} {
    %c0 = arith.constant 0 : index
    %0 = memref.load %arg0[%c0] : memref<8xi32, #tpu.memory_space<smem>>
    %1 = arith.index_cast %0 : i32 to index
    %c0_0 = arith.constant 0 : index
    %2 = vector.load %arg1[%1, %c0_0] : memref<40x128xf32, #tpu.memory_space<vmem>>, vector<1x128xf32>
    %c0_1 = arith.constant 0 : index
    %c0_2 = arith.constant 0 : index
    %3 = vector.load %arg11[%c0_1, %c0_2] : memref<8x256xf32, #tpu.memory_space<vmem>>, vector<1x128xf32>
    tpu.vector_store %arg11[%c0_1, %c0_2], %2 {strides = array<i32>} : memref<8x256xf32, #tpu.memory_space<vmem>>, vector<1x128xf32>,
    %c1 = arith.constant 1 : index
    %4 = memref.load %arg0[%c1] : memref<8xi32, #tpu.memory_space<smem>>
    %5 = arith.index_cast %4 : i32 to index
    %c0_3 = arith.constant 0 : index
    %6 = vector.load %arg1[%5, %c0_3] : memref<40x128xf32, #tpu.memory_space<vmem>>, vector<1x128xf32>
    %c1_4 = arith.constant 1 : index
    %c0_5 = arith.constant 0 : index
    %7 = vector.load %arg11[%c1_4, %c0_5] : memref<8x256xf32, #tpu.memory_space<vmem>>, vector<1x128xf32>
    tpu.vector_store %arg11[%c1_4, %c0_5], %6 {strides = array<i32>} : memref<8x256xf32, #tpu.memory_space<vmem>>, vector<1x128xf32>,
    %c2 = arith.constant 2 : index
    %8 = memref.load %arg0[%c2] : memref<8xi32, #tpu.memory_space<smem>>
    %9 = arith.index_cast %8 : i32 to index
    %c0_6 = arith.constant 0 : index
    %10 = vector.load %arg1[%9, %c0_6] : memref<40x128xf32, #tpu.memory_space<vmem>>, vector<1x128xf32>
    %c2_7 = arith.constant 2 : index
    %c0_8 = arith.constant 0 : index
    %11 = vector.load %arg11[%c2_7, %c0_8] : memref<8x256xf32, #tpu.memory_space<vmem>>, vector<1x128xf32>
    tpu.vector_store %arg11[%c2_7, %c0_8], %10 {strides = array<i32>} : memref<8x256xf32, #tpu.memory_space<vmem>>, vector<1x128xf32>,
    %c3 = arith.constant 3 : index
    %12 = memref.load %arg0[%c3] : memref<8xi32, #tpu.memory_space<smem>>
    %13 = arith.index_cast %12 : i32 to index
    %c0_9 = arith.constant 0 : index
    %14 = vector.load %arg1[%13, %c0_9] : memref<40x128xf32, #tpu.memory_space<vmem>>, vector<1x128xf32>
    %c3_10 = arith.constant 3 : index
    %c0_11 = arith.constant 0 : index
    %15 = vector.load %arg11[%c3_10, %c0_11] : memref<8x256xf32, #tpu.memory_space<vmem>>, vector<1x128xf32>
    tpu.vector_store %arg11[%c3_10, %c0_11], %14 {strides = array<i32>} : memref<8x256xf32, #tpu.memory_space<vmem>>, vector<1x128xf32>,
    %c4 = arith.constant 4 : index
    %16 = memref.load %arg0[%c4] : memref<8xi32, #tpu.memory_space<smem>>
    %17 = arith.index_cast %16 : i32 to index
    %c0_12 = arith.constant 0 : index
    %18 = vector.load %arg1[%17, %c0_12] : memref<40x128xf32, #tpu.memory_space<vmem>>, vector<1x128xf32>
    %c4_13 = arith.constant 4 : index
    %c0_14 = arith.constant 0 : index
    %19 = vector.load %arg11[%c4_13, %c0_14] : memref<8x256xf32, #tpu.memory_space<vmem>>, vector<1x128xf32>
    tpu.vector_store %arg11[%c4_13, %c0_14], %18 {strides = array<i32>} : memref<8x256xf32, #tpu.memory_space<vmem>>, vector<1x128xf32>,
    %c5 = arith.constant 5 : index
    %20 = memref.load %arg0[%c5] : memref<8xi32, #tpu.memory_space<smem>>
    %21 = arith.index_cast %20 : i32 to index
    %c0_15 = arith.constant 0 : index
    %22 = vector.load %arg1[%21, %c0_15] : memref<40x128xf32, #tpu.memory_space<vmem>>, vector<1x128xf32>
    %c5_16 = arith.constant 5 : index
    %c0_17 = arith.constant 0 : index
    %23 = vector.load %arg11[%c5_16, %c0_17] : memref<8x256xf32, #tpu.memory_space<vmem>>, vector<1x128xf32>
    tpu.vector_store %arg11[%c5_16, %c0_17], %22 {strides = array<i32>} : memref<8x256xf32, #tpu.memory_space<vmem>>, vector<1x128xf32>,
    %c6 = arith.constant 6 : index
    %24 = memref.load %arg0[%c6] : memref<8xi32, #tpu.memory_space<smem>>
    %25 = arith.index_cast %24 : i32 to index
    %c0_18 = arith.constant 0 : index
    %26 = vector.load %arg1[%25, %c0_18] : memref<40x128xf32, #tpu.memory_space<vmem>>, vector<1x128xf32>
    %c6_19 = arith.constant 6 : index
    %c0_20 = arith.constant 0 : index
    %27 = vector.load %arg11[%c6_19, %c0_20] : memref<8x256xf32, #tpu.memory_space<vmem>>, vector<1x128xf32>
    tpu.vector_store %arg11[%c6_19, %c0_20], %26 {strides = array<i32>} : memref<8x256xf32, #tpu.memory_space<vmem>>, vector<1x128xf32>,
    %c7 = arith.constant 7 : index
    %28 = memref.load %arg0[%c7] : memref<8xi32, #tpu.memory_space<smem>>
    %29 = arith.index_cast %28 : i32 to index
    %c0_21 = arith.constant 0 : index
    %30 = vector.load %arg1[%29, %c0_21] : memref<40x128xf32, #tpu.memory_space<vmem>>, vector<1x128xf32>
    %c7_22 = arith.constant 7 : index
    %c0_23 = arith.constant 0 : index
    %31 = vector.load %arg11[%c7_22, %c0_23] : memref<8x256xf32, #tpu.memory_space<vmem>>, vector<1x128xf32>
    tpu.vector_store %arg11[%c7_22, %c0_23], %30 {strides = array<i32>} : memref<8x256xf32, #tpu.memory_space<vmem>>, vector<1x128xf32>,
    %c0_24 = arith.constant 0 : index
    %c0_25 = arith.constant 0 : index
    %32 = vector.load %arg2[%c0_24, %c0_25] : memref<8x128xf32, #tpu.memory_space<vmem>>, vector<8x128xf32>
    %c0_26 = arith.constant 0 : index
    %c128 = arith.constant 128 : index
    %33 = vector.load %arg11[%c0_26, %c128] : memref<8x256xf32, #tpu.memory_space<vmem>>, vector<8x128xf32>
    tpu.vector_store %arg11[%c0_26, %c128], %32 {strides = array<i32>} : memref<8x256xf32, #tpu.memory_space<vmem>>, vector<8x128xf32>,
    %c0_27 = arith.constant 0 : index
    %c0_28 = arith.constant 0 : index
    %34 = vector.load %arg11[%c0_27, %c0_28] : memref<8x256xf32, #tpu.memory_space<vmem>>, vector<8x256xf32>
    %c0_29 = arith.constant 0 : index
    %c0_30 = arith.constant 0 : index
    %35 = vector.load %arg4[%c0_29, %c0_30] : memref<256x512xf32, #tpu.memory_space<vmem>>, vector<256x512xf32>
    %cst = arith.constant dense<0.000000e+00> : vector<8x512xf32>
    %36 = tpu.matmul %34, %35, %cst {dimension_numbers = #tpu.dot_dimension_numbers<[1], [0], [0], [1], [0, 0, 1, 1], [], []>} : vector<8x256xf32>, vector<256x512xf32>, vector<8x512xf32> -> vector<8x512xf32>
    %c0_31 = arith.constant 0 : index
    %c0_32 = arith.constant 0 : index
    %37 = vector.load %arg5[%c0_31, %c0_32] : memref<1x512xf32, #tpu.memory_space<vmem>>, vector<1x512xf32>
    %38 = vector.broadcast %37 : vector<1x512xf32> to vector<8x512xf32>
    %39 = arith.addf %36, %38 : vector<8x512xf32>
    %40 = vector.extract_strided_slice %39 {offsets = [0, 0], sizes = [8, 128], strides = [1, 1]} : vector<8x512xf32> to vector<8x128xf32>
    %41 = arith.negf %40 : vector<8x128xf32>
    %42 = math.exp %41 : vector<8x128xf32>
    %cst_33 = arith.constant 1.000000e+00 : f32
    %43 = vector.broadcast %cst_33 : f32 to vector<8x128xf32>
    %44 = arith.addf %43, %42 : vector<8x128xf32>
    %45 = arith.divf %43, %44 : vector<8x128xf32>
    %46 = vector.extract_strided_slice %39 {offsets = [0, 128], sizes = [8, 128], strides = [1, 1]} : vector<8x512xf32> to vector<8x128xf32>
    %47 = arith.negf %46 : vector<8x128xf32>
    %48 = math.exp %47 : vector<8x128xf32>
    %cst_34 = arith.constant 1.000000e+00 : f32
    %49 = vector.broadcast %cst_34 : f32 to vector<8x128xf32>
    %50 = arith.addf %49, %48 : vector<8x128xf32>
    %51 = arith.divf %49, %50 : vector<8x128xf32>
    %52 = vector.extract_strided_slice %39 {offsets = [0, 256], sizes = [8, 128], strides = [1, 1]} : vector<8x512xf32> to vector<8x128xf32>
    %53 = math.tanh %52 : vector<8x128xf32>
    %54 = vector.extract_strided_slice %39 {offsets = [0, 384], sizes = [8, 128], strides = [1, 1]} : vector<8x512xf32> to vector<8x128xf32>
    %55 = arith.negf %54 : vector<8x128xf32>
    %56 = math.exp %55 : vector<8x128xf32>
    %cst_35 = arith.constant 1.000000e+00 : f32
    %57 = vector.broadcast %cst_35 : f32 to vector<8x128xf32>
    %58 = arith.addf %57, %56 : vector<8x128xf32>
    %59 = arith.divf %57, %58 : vector<8x128xf32>
    %c0_36 = arith.constant 0 : index
    %c0_37 = arith.constant 0 : index
    %60 = vector.load %arg3[%c0_36, %c0_37] : memref<8x128xf32, #tpu.memory_space<vmem>>, vector<8x128xf32>
    %61 = arith.mulf %51, %60 : vector<8x128xf32>
    %62 = arith.mulf %45, %53 : vector<8x128xf32>
    %63 = arith.addf %61, %62 : vector<8x128xf32>
    %64 = math.tanh %63 : vector<8x128xf32>
    %65 = arith.mulf %59, %64 : vector<8x128xf32>
    %c0_38 = arith.constant 0 : index
    %c0_39 = arith.constant 0 : index
    %66 = vector.load %arg6[%c0_38, %c0_39] : memref<128x128xf32, #tpu.memory_space<vmem>>, vector<128x128xf32>
    %cst_40 = arith.constant dense<0.000000e+00> : vector<8x128xf32>
    %67 = tpu.matmul %65, %66, %cst_40 {dimension_numbers = #tpu.dot_dimension_numbers<[1], [0], [0], [1], [0, 0, 1, 1], [], []>} : vector<8x128xf32>, vector<128x128xf32>, vector<8x128xf32> -> vector<8x128xf32>
    %c0_41 = arith.constant 0 : index
    %c0_42 = arith.constant 0 : index
    %68 = vector.load %arg7[%c0_41, %c0_42] : memref<1x128xf32, #tpu.memory_space<vmem>>, vector<1x128xf32>
    %69 = vector.broadcast %68 : vector<1x128xf32> to vector<8x128xf32>
    %70 = arith.addf %67, %69 : vector<8x128xf32>
    %c0_43 = arith.constant 0 : index
    %c0_44 = arith.constant 0 : index
    %71 = vector.load %arg8[%c0_43, %c0_44] : memref<8x128xf32, #tpu.memory_space<vmem>>, vector<8x128xf32>
    tpu.vector_store %arg8[%c0_43, %c0_44], %70 {strides = array<i32>} : memref<8x128xf32, #tpu.memory_space<vmem>>, vector<8x128xf32>,
    %c0_45 = arith.constant 0 : index
    %c0_46 = arith.constant 0 : index
    %72 = vector.load %arg9[%c0_45, %c0_46] : memref<8x128xf32, #tpu.memory_space<vmem>>, vector<8x128xf32>
    tpu.vector_store %arg9[%c0_45, %c0_46], %65 {strides = array<i32>} : memref<8x128xf32, #tpu.memory_space<vmem>>, vector<8x128xf32>,
    %c0_47 = arith.constant 0 : index
    %c0_48 = arith.constant 0 : index
    %73 = vector.load %arg10[%c0_47, %c0_48] : memref<8x128xf32, #tpu.memory_space<vmem>>, vector<8x128xf32>
    tpu.vector_store %arg10[%c0_47, %c0_48], %63 {strides = array<i32>} : memref<8x128xf32, #tpu.memory_space<vmem>>, vector<8x128xf32>,
    return
  }
}

</mosaic_0001>

<bundles_post_ra>
// kernel: tpu_custom_call.1
= control target key start
LH: loop header
LB: loop body
LE: loop exit
PB: predicated region body
PF: predicated region fallthrough
CT: control target
= control target key end

     0   :  { %16 = vsyncpa [#allocation6], 0  ;;  %s1022_s0 = inlined_call_operand.vmem [shape: s32[8], index: 0, kind: input, shape index: {}]   ;;  %s1023_s1 = inlined_call_operand.hbm [shape: f32[40,128], index: 1, kind: input, shape index: {}]   ;;  %s1024_s2 = inlined_call_operand.hbm [shape: f32[8,128], index: 2, kind: input, shape index: {}, may-alias: {2,9}]   ;;  %s1025_s3 = inlined_call_operand.hbm [shape: f32[8,128], index: 3, kind: input, shape index: {}, may-alias: {3,10}]   ;;  %s1026_s4 = inlined_call_operand.hbm [shape: f32[256,512], index: 4, kind: input, shape index: {}]   ;;  %s1027_s5 = inlined_call_operand.vmem [shape: f32[1,512], index: 5, kind: input, shape index: {}]   ;;  %s1028_s6 = inlined_call_operand.hbm [shape: f32[128,128], index: 6, kind: input, shape index: {}]   ;;  %s1029_s7 = inlined_call_operand.vmem [shape: f32[1,128], index: 7, kind: input, shape index: {}]   ;;  %s1030_s8 = inlined_call_operand.hbm [shape: f32[8,128], index: 8, kind: output, shape index: {0}]   ;;  %s1031_s9 = inlined_call_operand.hbm [shape: f32[8,128], index: 9, kind: output, shape index: {1}, may-alias: {2,9}]   ;;  %s1032_s10 = inlined_call_operand.hbm [shape: f32[8,128], index: 10, kind: output, shape index: {2}, may-alias: {3,10}]  }
   0x1   :  { %17 = vsyncpa [#allocation4], 0 }
   0x2   :  { %18 = vsyncpa [#allocation9], 0 }
   0x3   :  { %19 = vsyncpa [#allocation12], 0 }
   0x4   :  { %20 = vsyncpa [#allocation5], 0  ;;  %s49_s15 = sshll.u32 %s1024_s2, 4  ;;  %s50_s15 = int_to_ptr.hbm [resolvable:$true] %s49_s15 }
   0x5   :  { %21 = vsyncpa [#allocation16], 0  ;;  %s877_s16 = smov [#allocation8]   ;;  %s70_s20 = sshll.u32 %s1026_s4, 4  ;;  %s71_s20 = int_to_ptr.hbm [resolvable:$true] %s70_s20 }
   0x6   :  { %s51_s17 = sshll.u32 %s877_s16, 4  ;;  %s878_s21 = smov [#allocation11]   ;;  %s52_s17 = int_to_ptr.vmem [resolvable:$true] %s51_s17 }
   0x7   :  { %54 = dma.hbm_to_vmem [thread:$0]  %s50_s15, 128, %s52_s17, [#allocation9]  }
   0x8   :  { %s72_s22 = sshll.u32 %s878_s21, 4  ;;  %s879_s23 = smov 512   ;;  %s73_s22 = int_to_ptr.vmem [resolvable:$true] %s72_s22 }
   0x9   :  { %s880_s24 = smov 32   ;;  %s27_s2 = sshll.u32 %s1022_s0, 4  ;;  %s28_s2 = int_to_ptr.vmem [resolvable:$true] %s27_s2 }
   0xa   :  { %78 = dma.hbm_to_vmem [thread:$0]  %s71_s20, 16384, %s73_s22, [#allocation12], %s879_s23, %s879_s23, %s880_s24  }
   0xb   :  { %s35_s29 = sshll.u32 %s1023_s1, 4  ;;  %s881_s30 = smov [#allocation3]   ;;  %s36_s29 = int_to_ptr.hbm [resolvable:$true] %s35_s29 }
   0xc   :  { %30 = dma.vmem_to_smem %s28_s2, 16, %s881_s30, [#allocation6]  }
   0xd   :  { %s882_s4 = smov [#allocation7]   ;;  %s883_s12 = smov 128  }
   0xe   :  { %s37_s11 = sshll.u32 %s882_s4, 4  ;;  %s884_s13 = smov 8   ;;  %s38_s11 = int_to_ptr.vmem [resolvable:$true] %s37_s11 }
   0xf   :  { %43 = dma.hbm_to_vmem [thread:$0]  %s36_s29, 640, %s38_s11, [#allocation4], %s883_s12, %s883_s12, %s884_s13  }
  0x10   :  { %s60_s16 = sshll.u32 %s1025_s3, 4  ;;  %s885_s0 = smov [#allocation10]   ;;  %s61_s16 = int_to_ptr.hbm [resolvable:$true] %s60_s16 }
  0x11   :  { %s62_s17 = sshll.u32 %s885_s0, 4  ;;  %s85_s1 = sshll.u32 %s1028_s6, 4  ;;  %s63_s17 = int_to_ptr.vmem [resolvable:$true] %s62_s17  ;;  %s86_s1 = int_to_ptr.hbm [resolvable:$true] %s85_s1 }
  0x12   :  { %65 = dma.hbm_to_vmem [thread:$0]  %s61_s16, 128, %s63_s17, [#allocation9]  }
  0x13   :  { %s886_s20 = smov [#allocation13]  }
  0x14   :  { %s87_s21 = sshll.u32 %s886_s20, 4  ;;  %s88_s21 = int_to_ptr.vmem [resolvable:$true] %s87_s21 }
  0x15   :  { %93 = dma.hbm_to_vmem [thread:$0]  %s86_s1, 2048, %s88_s21, [#allocation12], %s883_s12, %s883_s12, %s884_s13  }
  0x16   :  { %865 = dma.done.wait [#allocation6], 16  }
  0x17   :  { %866 = vsyncadd [#allocation6], 4294967280 }
  0x18   :  { %867 = dma.done.wait [#allocation4], 640  }
  0x19   :  { %868 = vsyncadd [#allocation4], 4294966656 }
  0x1a   :  { %869 = dma.done.wait [#allocation9], 256  }
  0x1b   :  { %870 = vsyncadd [#allocation9], 4294967040 }
  0x1c   :  { %871 = dma.done.wait [#allocation12], 18432  }
  0x1d   :  { %872 = vsyncadd [#allocation12], 4294948864 }
  0x1e   :  { %120 = sfence }
  0x1f   :  { %v218_v0 = vld [vmem:[#allocation11 + $0x1e8] sm:$0xff]  ;;  %v217_v3 = vld [vmem:[#allocation11 + $0x1e0] sm:$0xff]  ;;  %s963_s3 = sld [smem:[#allocation3]]  ;;  %s580_s18 = sshll.u32 %s1031_s9, 4  ;;  %s581_s18 = int_to_ptr.hbm [resolvable:$true] %s580_s18 }
  0x20   :  { %v214_v1 = vld [vmem:[#allocation11 + $0x1c8] sm:$0xff]  ;;  %335 = vmatpush.msra.mxu2 %v218_v0  ;;  %295 = vmatpush.msra.mxu0 %v217_v3  ;;  %v213_v6 = vld [vmem:[#allocation11 + $0x1c0] sm:$0xff]  ;;  %s965_s6 = sld [smem:[#allocation3 + $0x1]]  ;;  %s888_s19 = smov [#allocation17]  }
  0x21   :  { %v282_v2 = vld [vmem:[#allocation11 + $0x3e8] sm:$0xff]  ;;  %v281_v7 = vld [vmem:[#allocation11 + $0x3e0] sm:$0xff]  ;;  %s967_s22 = sld [smem:[#allocation3 + $0x2]]  ;;  %s589_s1 = sshll.u32 %s888_s19, 4  ;;  %s590_s1 = int_to_ptr.vmem [resolvable:$true] %s589_s1 }
  0x22   :  { %355 = vmatpush.msra.mxu3 %v282_v2  ;;  %v278_v4 = vld [vmem:[#allocation11 + $0x3c8] sm:$0xff]  ;;  %336 = vmatpush.msra.mxu2 %v214_v1  ;;  %v209_v9 = vld [vmem:[#allocation11 + $0x1a0] sm:$0xff]  ;;  %s969_s23 = sld [smem:[#allocation3 + $0x3]] }
  0x23   :  { %v210_v5 = vld [vmem:[#allocation11 + $0x1a8] sm:$0xff]  ;;  %v277_v10 = vld [vmem:[#allocation11 + $0x3c0] sm:$0xff]  ;;  %296 = vmatpush.msra.mxu0 %v213_v6  ;;  %315 = vmatpush.msra.mxu1 %v281_v7  ;;  %s971_s24 = sld [smem:[#allocation3 + $0x4]] }
  0x24   :  { %356 = vmatpush.msra.mxu3 %v278_v4  ;;  %v274_v8 = vld [vmem:[#allocation11 + $0x3a8] sm:$0xff]  ;;  %337 = vmatpush.msra.mxu2 %v210_v5  ;;  %v205_v13 = vld [vmem:[#allocation11 + $0x180] sm:$0xff]  ;;  %s973_s25 = sld [smem:[#allocation3 + $0x5]]  ;;  %v220_v4 = vld [vmem:[#allocation11 + $0x1f8] sm:$0xff] }
  0x25   :  { %v206_v11 = vld [vmem:[#allocation11 + $0x188] sm:$0xff]  ;;  %v273_v14 = vld [vmem:[#allocation11 + $0x3a0] sm:$0xff]  ;;  %297 = vmatpush.msra.mxu0 %v209_v9  ;;  %316 = vmatpush.msra.mxu1 %v277_v10  ;;  %s975_s26 = sld [smem:[#allocation3 + $0x6]]  ;;  %s122_s27 = scalar_lea.vmem [#allocation7], %s963_s3  ;;  %v216_v9 = vld [vmem:[#allocation11 + $0x1d8] sm:$0xff] }
  0x26   :  { %v270_v12 = vld [vmem:[#allocation11 + $0x388] sm:$0xff]  ;;  %357 = vmatpush.msra.mxu3 %v274_v8  ;;  %338 = vmatpush.msra.mxu2 %v206_v11  ;;  %v201_v17 = vld [vmem:[#allocation11 + $0x160] sm:$0xff]  ;;  %s977_s2 = sld [smem:[#allocation3 + $0x7]]  ;;  %v123_v57 = vld [vmem:[%s122_s27] sm:$0x1]  ;;  %s126_s28 = scalar_lea.vmem [#allocation7], %s965_s6 }
  0x27   :  { %v202_v15 = vld [vmem:[#allocation11 + $0x168] sm:$0xff]  ;;  %v269_v18 = vld [vmem:[#allocation11 + $0x380] sm:$0xff]  ;;  %298 = vmatpush.msra.mxu0 %v205_v13  ;;  %317 = vmatpush.msra.mxu1 %v273_v14  ;;  %124 = vst [vmem:[#allocation2] sm:$0x1] %v123_v57  ;;  %v127_v58 = vld [vmem:[%s126_s28] sm:$0x1] }
  0x28   :  { %v266_v16 = vld [vmem:[#allocation11 + $0x368] sm:$0xff]  ;;  %358 = vmatpush.msra.mxu3 %v270_v12  ;;  %339 = vmatpush.msra.mxu2 %v202_v15  ;;  %v197_v21 = vld [vmem:[#allocation11 + $0x140] sm:$0xff]  ;;  %s130_s29 = scalar_lea.vmem [#allocation7], %s967_s22  ;;  %128 = vst [vmem:[#allocation2 + $0x1] sm:$0x1] %v127_v58  ;;  %s134_s30 = scalar_lea.vmem [#allocation7], %s969_s23 }
  0x29   :  { %v198_v19 = vld [vmem:[#allocation11 + $0x148] sm:$0xff]  ;;  %v265_v22 = vld [vmem:[#allocation11 + $0x360] sm:$0xff]  ;;  %299 = vmatpush.msra.mxu0 %v201_v17  ;;  %318 = vmatpush.msra.mxu1 %v269_v18  ;;  %v131_v59 = vld [vmem:[%s130_s29] sm:$0x1]  ;;  %s138_s4 = scalar_lea.vmem [#allocation7], %s971_s24  ;;  %s591_s3 = sshll.u32 %s1032_s10, 4  ;;  %s592_s3 = int_to_ptr.hbm [resolvable:$true] %s591_s3 }
  0x2a   :  { %v262_v20 = vld [vmem:[#allocation11 + $0x348] sm:$0xff]  ;;  %359 = vmatpush.msra.mxu3 %v266_v16  ;;  %340 = vmatpush.msra.mxu2 %v198_v19  ;;  %v193_v25 = vld [vmem:[#allocation11 + $0x120] sm:$0xff]  ;;  %v135_v60 = vld [vmem:[%s134_s30] sm:$0x1]  ;;  %132 = vst [vmem:[#allocation2 + $0x2] sm:$0x1] %v131_v59 }
  0x2b   :  { %v194_v23 = vld [vmem:[#allocation11 + $0x128] sm:$0xff]  ;;  %v261_v26 = vld [vmem:[#allocation11 + $0x340] sm:$0xff]  ;;  %300 = vmatpush.msra.mxu0 %v197_v21  ;;  %319 = vmatpush.msra.mxu1 %v265_v22  ;;  %v139_v61 = vld [vmem:[%s138_s4] sm:$0x1]  ;;  %s142_s11 = scalar_lea.vmem [#allocation7], %s973_s25  ;;  %s146_s12 = scalar_lea.vmem [#allocation7], %s975_s26 }
  0x2c   :  { %v258_v24 = vld [vmem:[#allocation11 + $0x328] sm:$0xff]  ;;  %360 = vmatpush.msra.mxu3 %v262_v20  ;;  %341 = vmatpush.msra.mxu2 %v194_v23  ;;  %v189_v29 = vld [vmem:[#allocation11 + $0x100] sm:$0xff]  ;;  %v143_v0 = vld [vmem:[%s142_s11] sm:$0x1]  ;;  %136 = vst [vmem:[#allocation2 + $0x3] sm:$0x1] %v135_v60 }
  0x2d   :  { %v190_v27 = vld [vmem:[#allocation11 + $0x108] sm:$0xff]  ;;  %v257_v30 = vld [vmem:[#allocation11 + $0x320] sm:$0xff]  ;;  %301 = vmatpush.msra.mxu0 %v193_v25  ;;  %320 = vmatpush.msra.mxu1 %v261_v26  ;;  %v147_v3 = vld [vmem:[%s146_s12] sm:$0x1]  ;;  %140 = vst [vmem:[#allocation2 + $0x4] sm:$0x1] %v139_v61 }
  0x2e   :  { %v254_v28 = vld [vmem:[#allocation11 + $0x308] sm:$0xff]  ;;  %361 = vmatpush.msra.mxu3 %v258_v24  ;;  %342 = vmatpush.msra.mxu2 %v190_v27  ;;  %v185_v33 = vld [vmem:[#allocation11 + $0xe0] sm:$0xff]  ;;  %s150_s13 = scalar_lea.vmem [#allocation7], %s977_s2  ;;  %v284_v8 = vld [vmem:[#allocation11 + $0x3f8] sm:$0xff]  ;;  %144 = vst [vmem:[#allocation2 + $0x5] sm:$0x1] %v143_v0 }
  0x2f   :  { %v186_v31 = vld [vmem:[#allocation11 + $0xe8] sm:$0xff]  ;;  %v253_v34 = vld [vmem:[#allocation11 + $0x300] sm:$0xff]  ;;  %302 = vmatpush.msra.mxu0 %v189_v29  ;;  %321 = vmatpush.msra.mxu1 %v257_v30  ;;  %v151_v6 = vld [vmem:[%s150_s13] sm:$0x1]  ;;  %148 = vst [vmem:[#allocation2 + $0x6] sm:$0x1] %v147_v3 }
  0x30   :  { %v250_v32 = vld [vmem:[#allocation11 + $0x2e8] sm:$0xff]  ;;  %362 = vmatpush.msra.mxu3 %v254_v28  ;;  %343 = vmatpush.msra.mxu2 %v186_v31  ;;  %v181_v37 = vld [vmem:[#allocation11 + $0xc0] sm:$0xff]  ;;  %v219_v10 = vld [vmem:[#allocation11 + $0x1f0] sm:$0xff]  ;;  %152 = vst [vmem:[#allocation2 + $0x7] sm:$0x1] %v151_v6  ;;  %s889_s23 = smov [#allocation14]  }
  0x31   :  { %v182_v35 = vld [vmem:[#allocation11 + $0xc8] sm:$0xff]  ;;  %v249_v38 = vld [vmem:[#allocation11 + $0x2e0] sm:$0xff]  ;;  %303 = vmatpush.msra.mxu0 %v185_v33  ;;  %322 = vmatpush.msra.mxu1 %v253_v34  ;;  %v280_v12 = vld [vmem:[#allocation11 + $0x3d8] sm:$0xff]  ;;  %s567_s9 = sshll.u32 %s889_s23, 4  ;;  %s569_s26 = sshll.u32 %s1030_s8, 4  ;;  %s568_s9 = int_to_ptr.vmem [resolvable:$true] %s567_s9  ;;  %s570_s26 = int_to_ptr.hbm [resolvable:$true] %s569_s26 }
  0x32   :  { %v246_v36 = vld [vmem:[#allocation11 + $0x2c8] sm:$0xff]  ;;  %363 = vmatpush.msra.mxu3 %v250_v32  ;;  %344 = vmatpush.msra.mxu2 %v182_v35  ;;  %v177_v41 = vld [vmem:[#allocation11 + $0xa0] sm:$0xff]  ;;  %v987_v13 = vld [vmem:[#allocation8] sm:$0xff] }
  0x33   :  { %v178_v39 = vld [vmem:[#allocation11 + $0xa8] sm:$0xff]  ;;  %v245_v42 = vld [vmem:[#allocation11 + $0x2c0] sm:$0xff]  ;;  %304 = vmatpush.msra.mxu0 %v181_v37  ;;  %323 = vmatpush.msra.mxu1 %v249_v38  ;;  %v212_v14 = vld [vmem:[#allocation11 + $0x1b8] sm:$0xff] }
  0x34   :  { %v242_v40 = vld [vmem:[#allocation11 + $0x2a8] sm:$0xff]  ;;  %364 = vmatpush.msra.mxu3 %v246_v36  ;;  %345 = vmatpush.msra.mxu2 %v178_v39  ;;  %v173_v46 = vld [vmem:[#allocation11 + $0x80] sm:$0xff]  ;;  %v215_v15 = vld [vmem:[#allocation11 + $0x1d0] sm:$0xff] }
  0x35   :  { %v174_v43 = vld [vmem:[#allocation11 + $0x88] sm:$0xff]  ;;  %v241_v47 = vld [vmem:[#allocation11 + $0x2a0] sm:$0xff]  ;;  %305 = vmatpush.msra.mxu0 %v177_v41  ;;  %324 = vmatpush.msra.mxu1 %v245_v42  ;;  %v283_v16 = vld [vmem:[#allocation11 + $0x3f0] sm:$0xff] }
  0x36   :  { %v238_v44 = vld [vmem:[#allocation11 + $0x288] sm:$0xff]  ;;  %365 = vmatpush.msra.mxu3 %v242_v40  ;;  %v169_v50 = vld [vmem:[#allocation11 + $0x60] sm:$0xff]  ;;  %346 = vmatpush.msra.mxu2 %v174_v43  ;;  %v276_v17 = vld [vmem:[#allocation11 + $0x3b8] sm:$0xff] }
  0x37   :  { %v170_v45 = vld [vmem:[#allocation11 + $0x68] sm:$0xff]  ;;  %v237_v51 = vld [vmem:[#allocation11 + $0x280] sm:$0xff]  ;;  %306 = vmatpush.msra.mxu0 %v173_v46  ;;  %325 = vmatpush.msra.mxu1 %v241_v47  ;;  %v208_v18 = vld [vmem:[#allocation11 + $0x198] sm:$0xff] }
  0x38   :  { %v166_v48 = vld [vmem:[#allocation11 + $0x48] sm:$0xff]  ;;  %366 = vmatpush.msra.mxu3 %v238_v44  ;;  %v165_v53 = vld [vmem:[#allocation11 + $0x40] sm:$0xff]  ;;  %347 = vmatpush.msra.mxu2 %v170_v45  ;;  %v211_v19 = vld [vmem:[#allocation11 + $0x1b0] sm:$0xff] }
  0x39   :  { %v234_v49 = vld [vmem:[#allocation11 + $0x268] sm:$0xff]  ;;  %v233_v55 = vld [vmem:[#allocation11 + $0x260] sm:$0xff]  ;;  %307 = vmatpush.msra.mxu0 %v169_v50  ;;  %326 = vmatpush.msra.mxu1 %v237_v51  ;;  %v279_v20 = vld [vmem:[#allocation11 + $0x3d0] sm:$0xff] }
  0x3a   :  { %v230_v52 = vld [vmem:[#allocation11 + $0x248] sm:$0xff]  ;;  %367 = vmatpush.msra.mxu3 %v234_v49  ;;  %348 = vmatpush.msra.mxu2 %v166_v48  ;;  %v161_v62 = vld [vmem:[#allocation11 + $0x20] sm:$0xff]  ;;  %v272_v21 = vld [vmem:[#allocation11 + $0x398] sm:$0xff] }
  0x3b   :  { %v162_v54 = vld [vmem:[#allocation11 + $0x28] sm:$0xff]  ;;  %v229_v63 = vld [vmem:[#allocation11 + $0x240] sm:$0xff]  ;;  %308 = vmatpush.msra.mxu0 %v165_v53  ;;  %327 = vmatpush.msra.mxu1 %v233_v55  ;;  %v204_v22 = vld [vmem:[#allocation11 + $0x178] sm:$0xff] }
  0x3c   :  { %v226_v56 = vld [vmem:[#allocation11 + $0x228] sm:$0xff]  ;;  %368 = vmatpush.msra.mxu3 %v230_v52  ;;  %349 = vmatpush.msra.mxu2 %v162_v54  ;;  %v157_v5 = vld [vmem:[#allocation11] sm:$0xff]  ;;  %v207_v23 = vld [vmem:[#allocation11 + $0x190] sm:$0xff] }
  0x3d   :  { %v158_v1 = vld [vmem:[#allocation11 + $0x8] sm:$0xff]  ;;  %309 = vmatpush.msra.mxu0 %v161_v62  ;;  %328 = vmatpush.msra.mxu1 %v229_v63  ;;  %v225_v7 = vld [vmem:[#allocation11 + $0x220] sm:$0xff]  ;;  %v989_v24 = vld [vmem:[#allocation2] sm:$0xff] }
  0x3e   :  { %v222_v2 = vld [vmem:[#allocation11 + $0x208] sm:$0xff]  ;;  %369 = vmatpush.msra.mxu3 %v226_v56  ;;  %350 = vmatpush.msra.mxu2 %v158_v1  ;;  %v221_v11 = vld [vmem:[#allocation11 + $0x200] sm:$0xff]  ;;  %v275_v25 = vld [vmem:[#allocation11 + $0x3b0] sm:$0xff] }
  0x3f   :  { %310 = vmatpush.msra.mxu0 %v157_v5  ;;  %329 = vmatpush.msra.mxu1 %v225_v7  ;;  %v268_v26 = vld [vmem:[#allocation11 + $0x378] sm:$0xff]  ;;  %v203_v28 = vld [vmem:[#allocation11 + $0x170] sm:$0xff] }
  0x40   :  { %370 = vmatpush.msra.mxu3 %v222_v2  ;;  %415 = vmatpush.msrb.mxu2 %v220_v4  ;;  %v200_v27 = vld [vmem:[#allocation11 + $0x158] sm:$0xff]  ;;  %v271_v29 = vld [vmem:[#allocation11 + $0x390] sm:$0xff] }
  0x41   :  { %375 = vmatpush.msrb.mxu0 %v219_v10  ;;  %330 = vmatpush.msra.mxu1 %v221_v11  ;;  %v264_v30 = vld [vmem:[#allocation11 + $0x358] sm:$0xff]  ;;  %v199_v32 = vld [vmem:[#allocation11 + $0x150] sm:$0xff] }
  0x42   :  { %435 = vmatpush.msrb.mxu3 %v284_v8  ;;  %416 = vmatpush.msrb.mxu2 %v216_v9  ;;  %v196_v31 = vld [vmem:[#allocation11 + $0x138] sm:$0xff]  ;;  %v267_v33 = vld [vmem:[#allocation11 + $0x370] sm:$0xff] }
  0x43   :  { %376 = vmatpush.msrb.mxu0 %v215_v15  ;;  %395 = vmatpush.msrb.mxu1 %v283_v16  ;;  %v192_v34 = vld [vmem:[#allocation11 + $0x118] sm:$0xff]  ;;  %v195_v36 = vld [vmem:[#allocation11 + $0x130] sm:$0xff] }
  0x44   :  { %436 = vmatpush.msrb.mxu3 %v280_v12  ;;  %417 = vmatpush.msrb.mxu2 %v212_v14  ;;  %v260_v35 = vld [vmem:[#allocation11 + $0x338] sm:$0xff]  ;;  %v263_v37 = vld [vmem:[#allocation11 + $0x350] sm:$0xff] }
  0x45   :  { %377 = vmatpush.msrb.mxu0 %v211_v19  ;;  %396 = vmatpush.msrb.mxu1 %v279_v20  ;;  %v188_v38 = vld [vmem:[#allocation11 + $0xf8] sm:$0xff]  ;;  %v191_v40 = vld [vmem:[#allocation11 + $0x110] sm:$0xff]  ;;  %v532_v20 = vld [vmem:[#allocation13 + $0x68] sm:$0xff] }
  0x46   :  { %437 = vmatpush.msrb.mxu3 %v276_v17  ;;  %418 = vmatpush.msrb.mxu2 %v208_v18  ;;  %v256_v39 = vld [vmem:[#allocation11 + $0x318] sm:$0xff]  ;;  %v259_v41 = vld [vmem:[#allocation11 + $0x330] sm:$0xff] }
  0x47   :  { %351 = vmatmul.f32.vlgmr.msra.gmra.mxu2 %v989_v24  ;;  %371 = vmatmul.f32.vlgmr.msra.gmra.mxu3 %v987_v13  ;;  %v184_v42 = vld [vmem:[#allocation11 + $0xd8] sm:$0xff]  ;;  %v187_v44 = vld [vmem:[#allocation11 + $0xf0] sm:$0xff] }
  0x48   :  { %438 = vmatpush.msrb.mxu3 %v272_v21  ;;  %419 = vmatpush.msrb.mxu2 %v204_v22  ;;  %v252_v43 = vld [vmem:[#allocation11 + $0x2f8] sm:$0xff]  ;;  %v255_v45 = vld [vmem:[#allocation11 + $0x310] sm:$0xff]  ;;  %v531_v22 = vld [vmem:[#allocation13 + $0x60] sm:$0xff] }
  0x49   :  { %378 = vmatpush.msrb.mxu0 %v207_v23  ;;  %397 = vmatpush.msrb.mxu1 %v275_v25  ;;  %v180_v46 = vld [vmem:[#allocation11 + $0xb8] sm:$0xff]  ;;  %v183_v48 = vld [vmem:[#allocation11 + $0xd0] sm:$0xff] }
  0x4a   :  { %439 = vmatpush.msrb.mxu3 %v268_v26  ;;  %420 = vmatpush.msrb.mxu2 %v200_v27  ;;  %v248_v47 = vld [vmem:[#allocation11 + $0x2d8] sm:$0xff]  ;;  %v251_v49 = vld [vmem:[#allocation11 + $0x2f0] sm:$0xff] }
  0x4b   :  { %379 = vmatpush.msrb.mxu0 %v203_v28  ;;  %398 = vmatpush.msrb.mxu1 %v271_v29  ;;  %v176_v50 = vld [vmem:[#allocation11 + $0x98] sm:$0xff]  ;;  %v179_v52 = vld [vmem:[#allocation11 + $0xb0] sm:$0xff]  ;;  %v528_v29 = vld [vmem:[#allocation13 + $0x48] sm:$0xff] }
  0x4c   :  { %440 = vmatpush.msrb.mxu3 %v264_v30  ;;  %421 = vmatpush.msrb.mxu2 %v196_v31  ;;  %v244_v51 = vld [vmem:[#allocation11 + $0x2b8] sm:$0xff]  ;;  %v247_v53 = vld [vmem:[#allocation11 + $0x2d0] sm:$0xff]  ;;  %v527_v30 = vld [vmem:[#allocation13 + $0x40] sm:$0xff] }
  0x4d   :  { %311 = vmatmul.f32.vlgmr.msra.gmra.mxu0 %v989_v24  ;;  %399 = vmatpush.msrb.mxu1 %v267_v33  ;;  %v172_v54 = vld [vmem:[#allocation11 + $0x78] sm:$0xff]  ;;  %v175_v56 = vld [vmem:[#allocation11 + $0x90] sm:$0xff] }
  0x4e   :  { %380 = vmatpush.msrb.mxu0 %v199_v32  ;;  %422 = vmatpush.msrb.mxu2 %v192_v34  ;;  %v240_v55 = vld [vmem:[#allocation11 + $0x298] sm:$0xff]  ;;  %v243_v57 = vld [vmem:[#allocation11 + $0x2b0] sm:$0xff] }
  0x4f   :  { %441 = vmatpush.msrb.mxu3 %v260_v35  ;;  %331 = vmatmul.f32.vlgmr.msra.gmra.mxu1 %v987_v13  ;;  %v168_v58 = vld [vmem:[#allocation11 + $0x58] sm:$0xff]  ;;  %v171_v60 = vld [vmem:[#allocation11 + $0x70] sm:$0xff] }
  0x50   :  { %381 = vmatpush.msrb.mxu0 %v195_v36  ;;  %400 = vmatpush.msrb.mxu1 %v263_v37  ;;  %v236_v59 = vld [vmem:[#allocation11 + $0x278] sm:$0xff]  ;;  %v239_v61 = vld [vmem:[#allocation11 + $0x290] sm:$0xff]  ;;  %v524_v37 = vld [vmem:[#allocation13 + $0x28] sm:$0xff] }
  0x51   :  { %423 = vmatpush.msrb.mxu2 %v188_v38  ;;  %442 = vmatpush.msrb.mxu3 %v256_v39  ;;  %v164_v62 = vld [vmem:[#allocation11 + $0x38] sm:$0xff]  ;;  %v167_v0 = vld [vmem:[#allocation11 + $0x50] sm:$0xff]  ;;  %v523_v38 = vld [vmem:[#allocation13 + $0x20] sm:$0xff] }
  0x52   :  { %382 = vmatpush.msrb.mxu0 %v191_v40  ;;  %401 = vmatpush.msrb.mxu1 %v259_v41  ;;  %v232_v63 = vld [vmem:[#allocation11 + $0x258] sm:$0xff]  ;;  %v235_v1 = vld [vmem:[#allocation11 + $0x270] sm:$0xff] }
  0x53   :  { %424 = vmatpush.msrb.mxu2 %v184_v42  ;;  %443 = vmatpush.msrb.mxu3 %v252_v43  ;;  %v160_v2 = vld [vmem:[#allocation11 + $0x18] sm:$0xff]  ;;  %v163_v4 = vld [vmem:[#allocation11 + $0x30] sm:$0xff] }
  0x54   :  { %383 = vmatpush.msrb.mxu0 %v187_v44  ;;  %402 = vmatpush.msrb.mxu1 %v255_v45  ;;  %v228_v3 = vld [vmem:[#allocation11 + $0x238] sm:$0xff]  ;;  %v231_v5 = vld [vmem:[#allocation11 + $0x250] sm:$0xff]  ;;  %v520_v45 = vld [vmem:[#allocation13 + $0x8] sm:$0xff] }
  0x55   :  { %425 = vmatpush.msrb.mxu2 %v180_v46  ;;  %444 = vmatpush.msrb.mxu3 %v248_v47  ;;  %v224_v6 = vld [vmem:[#allocation11 + $0x218] sm:$0xff]  ;;  %v159_v7 = vld [vmem:[#allocation11 + $0x10] sm:$0xff] }
  0x56   :  { %384 = vmatpush.msrb.mxu0 %v183_v48  ;;  %403 = vmatpush.msrb.mxu1 %v251_v49  ;;  %v227_v8 = vld [vmem:[#allocation11 + $0x230] sm:$0xff]  ;;  %v1002_v10 = vld [vmem:[%s1027_s5] sm:$0xf]  ;;  %s887_s5 = smov [#allocation15]  }
  0x57   :  { %426 = vmatpush.msrb.mxu2 %v176_v50  ;;  %445 = vmatpush.msrb.mxu3 %v244_v51  ;;  %v223_v9 = vld [vmem:[#allocation11 + $0x210] sm:$0xff]  ;;  %v287_v11 = vperm.slane %v1002_v10, 0  ;;  %v534_v12 = vld [vmem:[#allocation13 + $0x78] sm:$0xff]  ;;  %v288_v14 = vperm.slane %v1002_v10, 1  ;;  %v289_v40 = vperm.slane %v1002_v10, 2  ;;  %v290_v44 = vperm.slane %v1002_v10, 3 }
  0x58   :  { %385 = vmatpush.msrb.mxu0 %v179_v52  ;;  %404 = vmatpush.msrb.mxu1 %v247_v53  ;;  %v533_v15 = vld [vmem:[#allocation13 + $0x70] sm:$0xff]  ;;  %v530_v25 = vld [vmem:[#allocation13 + $0x58] sm:$0xff]  ;;  %v519_v53 = vld [vmem:[#allocation13] sm:$0xff]  ;;  %s578_s16 = sshll.u32 %s887_s5, 4  ;;  %s579_s16 = int_to_ptr.vmem [resolvable:$true] %s578_s16 }
  0x59   :  { %427 = vmatpush.msrb.mxu2 %v172_v54  ;;  %446 = vmatpush.msrb.mxu3 %v240_v55  ;;  %v529_v28 = vld [vmem:[#allocation13 + $0x50] sm:$0xff]  ;;  %v526_v31 = vld [vmem:[#allocation13 + $0x38] sm:$0xff] }
  0x5a   :  { %386 = vmatpush.msrb.mxu0 %v175_v56  ;;  %405 = vmatpush.msrb.mxu1 %v243_v57  ;;  %v525_v35 = vld [vmem:[#allocation13 + $0x30] sm:$0xff]  ;;  %v522_v39 = vld [vmem:[#allocation13 + $0x18] sm:$0xff] }
  0x5b   :  { %428 = vmatpush.msrb.mxu2 %v168_v58  ;;  %447 = vmatpush.msrb.mxu3 %v236_v59  ;;  %v521_v41 = vld [vmem:[#allocation13 + $0x10] sm:$0xff] }
  0x5c   :  { %387 = vmatpush.msrb.mxu0 %v171_v60  ;;  %406 = vmatpush.msrb.mxu1 %v239_v61 }
  0x5d   :  { %429 = vmatpush.msrb.mxu2 %v164_v62  ;;  %448 = vmatpush.msrb.mxu3 %v232_v63 }
  0x5e   :  { %388 = vmatpush.msrb.mxu0 %v167_v0  ;;  %407 = vmatpush.msrb.mxu1 %v235_v1 }
  0x5f   :  { %430 = vmatpush.msrb.mxu2 %v160_v2  ;;  %449 = vmatpush.msrb.mxu3 %v228_v3 }
  0x60   :  { %389 = vmatpush.msrb.mxu0 %v163_v4  ;;  %408 = vmatpush.msrb.mxu1 %v231_v5 }
  0x61   :  { %431 = vmatmul.f32.vlgmr.msrb.gmra.mxu2 %v989_v24  ;;  %450 = vmatpush.msrb.mxu3 %v224_v6 }
  0x62   :  { %390 = vmatpush.msrb.mxu0 %v159_v7  ;;  %409 = vmatpush.msrb.mxu1 %v227_v8  ;;  %v513_v7 = vld [vmem:[#allocation10] sm:$0xff] }
  0x63   :  { %451 = vmatmul.f32.vlgmr.msrb.gmra.mxu3 %v987_v13  ;;  %391 = vmatmul.f32.vlgmr.msrb.gmra.mxu0 %v989_v24 }
  0x64   :  { %410 = vmatpush.msrb.mxu1 %v223_v9  ;;  %539 = vmatpush.msra.mxu0 %v534_v12 }
  0x65   :  { %411 = vmatmul.f32.vlgmr.msrb.gmra.mxu1 %v987_v13 }
  0x66   :  { %540 = vmatpush.msra.mxu0 %v533_v15 }
  0x68   :  { %541 = vmatpush.msra.mxu0 %v532_v20 }
  0x6a   :  { %542 = vmatpush.msra.mxu0 %v531_v22 }
  0x6c   :  { %543 = vmatpush.msra.mxu0 %v530_v25 }
  0x6e   :  { %544 = vmatpush.msra.mxu0 %v529_v28 }
  0x70   :  { %545 = vmatpush.msra.mxu0 %v528_v29  ;;  %v644_v29 = vld [vmem:[%s1029_s7] ss:$0 sm:$0xff] }
  0x72   :  { %546 = vmatpush.msra.mxu0 %v527_v30 }
  0x74   :  { %547 = vmatpush.msra.mxu0 %v526_v31 }
  0x76   :  { %548 = vmatpush.msra.mxu0 %v525_v35 }
  0x78   :  { %549 = vmatpush.msra.mxu0 %v524_v37 }
  0x7a   :  { %550 = vmatpush.msra.mxu0 %v523_v38 }
  0x7c   :  { %551 = vmatpush.msra.mxu0 %v522_v39 }
  0x7e   :  { %552 = vmatpush.msra.mxu0 %v521_v41 }
  0x80   :  { %553 = vmatpush.msra.mxu0 %v520_v45 }
  0x82   :  { %554 = vmatpush.msra.mxu0 %v519_v53 }
  0xca   :  { %v312_v16 = vpop.f32.mrf.mxu0  ;;  %v352_v18 = vpop.f32.mrf.mxu2 }
  0xcb   :  { %v313_v17 = vadd.f32 %v312_v16, %v287_v11  ;;  %v372_v19 = vpop.f32.mrf.mxu3  ;;  %v353_v21 = vadd.f32 %v352_v18, %v288_v14 }
  0xcc   :  { %v332_v13 = vpop.f32.mrf.mxu1 }
  0xcd   :  { %v333_v23 = vadd.f32 %v332_v13, %v313_v17  ;;  %v373_v24 = vadd.f32 %v372_v19, %v353_v21 }
  0xcf   :  { %v628_v26 = vmul.f32 -1.442695, %v333_v23  ;;  %v629_v27 = vmul.f32 -1.442695, %v373_v24 }
  0xd1   :  { %645 = vpow2.f32 %v628_v26 }
  0xd2   :  { %647 = vpow2.f32 %v629_v27 }
  0xd7   :  { %v646_v32 = vpop.eup %645 }
  0xd8   :  { %v648_v33 = vpop.eup %647  ;;  %v458_v34 = vadd.f32 1.0, %v646_v32 }
  0xd9   :  { %v477_v36 = vadd.f32 1.0, %v648_v33 }
  0xda   :  { %649 = vrcp.f32 %v458_v34  ;;  %vm464_vm0 = vweird.f32 %v458_v34  ;;  %v468_v51 = vand.u32 2147483647, %v458_v34  ;;  %v470_v52 = vand.u32 2147483648, %v458_v34 }
  0xdb   :  { %651 = vrcp.f32 %v477_v36  ;;  %vm483_vm1 = vweird.f32 %v477_v36  ;;  %v489_v55 = vand.u32 2147483648, %v477_v36  ;;  %v487_v59 = vand.u32 2147483647, %v477_v36 }
  0xdc   :  { %v471_v0 = vor.u32 1.1754944e-38, %v470_v52  ;;  %vm469_vm6 = vcmp.eq.f32.partialorder %v468_v51, 8.507059e+37 }
  0xdd   :  { %v490_v2 = vor.u32 1.1754944e-38, %v489_v55  ;;  %vm488_vm7 = vcmp.eq.f32.partialorder %v487_v59, 8.507059e+37 }
  0xe0   :  { %v650_v42 = vpop.eup %649  ;;  %v392_v43 = vpop.f32.mrf.mxu0 }
  0xe1   :  { %v652_v46 = vpop.eup %651  ;;  %v460_v47 = vmul.f32 %v650_v42, %v458_v34  ;;  %v393_v48 = vadd.f32 %v392_v43, %v289_v40  ;;  %vm465_vm2 = vweird.f32 %v650_v42 }
  0xe2   :  { %v479_v49 = vmul.f32 %v652_v46, %v477_v36  ;;  %v412_v50 = vpop.f32.mrf.mxu1  ;;  %vm484_vm3 = vweird.f32 %v652_v46  ;;  %vm466_vm4 = vmor %vm464_vm0, %vm465_vm2 }
  0xe3   :  { %v461_v54 = vsub.f32 1.0, %v460_v47  ;;  %v413_v56 = vadd.f32 %v412_v50, %v393_v48  ;;  %vm485_vm5 = vmor %vm483_vm1, %vm484_vm3 }
  0xe4   :  { %v432_v57 = vpop.f32.mrf.mxu2  ;;  %v480_v58 = vsub.f32 1.0, %v479_v49 }
  0xe5   :  { %v433_v60 = vadd.f32 %v432_v57, %v290_v44  ;;  %v462_v61 = vmul.f32 %v650_v42, %v461_v54  ;;  %653 = vtanh.f32 %v413_v56 }
  0xe6   :  { %v452_v62 = vpop.f32.mrf.mxu3  ;;  %v481_v63 = vmul.f32 %v652_v46, %v480_v58 }
  0xe7   :  { %v453_v1 = vadd.f32 %v452_v62, %v433_v60  ;;  %v463_v3 = vadd.f32 %v650_v42, %v462_v61 }
  0xe8   :  { %v482_v4 = vadd.f32 %v652_v46, %v481_v63 }
  0xe9   :  { %v630_v5 = vmul.f32 -1.442695, %v453_v1  ;;  %v467_v6 = vsel %vm466_vm4, %v650_v42, %v463_v3 }
  0xea   :  { %v472_v8 = vsel %vm469_vm6, %v471_v0, %v467_v6  ;;  %v486_v9 = vsel %vm485_vm5, %v652_v46, %v482_v4 }
  0xeb   :  { %655 = vpow2.f32 %v630_v5  ;;  %v654_v10 = vpop.eup %653  ;;  %v491_v11 = vsel %vm488_vm7, %v490_v2, %v486_v9 }
  0xec   :  { %v514_v12 = vmul.f32 %v513_v7, %v491_v11  ;;  %v515_v14 = vmul.f32 %v654_v10, %v472_v8 }
  0xee   :  { %v516_v15 = vadd.f32 %v515_v14, %v514_v12 }
  0xf0   :  { %561 = vst [vmem:[#allocation17] sm:$0xff] %v516_v15 }
  0xf1   :  { %v656_v16 = vpop.eup %655 }
  0xf2   :  { %v497_v17 = vadd.f32 1.0, %v656_v16 }
  0xf4   :  { %657 = vrcp.f32 %v497_v17  ;;  %v509_v21 = vand.u32 2147483648, %v497_v17  ;;  %v507_v22 = vand.u32 2147483647, %v497_v17  ;;  %vm503_vm9 = vweird.f32 %v497_v17 }
  0xf5   :  { %659 = vtanh.f32 %v516_v15 }
  0xf6   :  { %v510_v24 = vor.u32 1.1754944e-38, %v509_v21  ;;  %vm508_vm11 = vcmp.eq.f32.partialorder %v507_v22, 8.507059e+37 }
  0xfa   :  { %v658_v18 = vpop.eup %657 }
  0xfb   :  { %v499_v19 = vmul.f32 %v658_v18, %v497_v17  ;;  %vm504_vm8 = vweird.f32 %v658_v18  ;;  %v660_v26 = vpop.eup %659 }
  0xfc   :  { %vm505_vm10 = vmor %vm503_vm9, %vm504_vm8 }
  0xfd   :  { %v500_v20 = vsub.f32 1.0, %v499_v19 }
  0xff   :  { %v501_v13 = vmul.f32 %v658_v18, %v500_v20 }
 0x101   :  { %v502_v23 = vadd.f32 %v658_v18, %v501_v13 }
 0x103   :  { %v506_v25 = vsel %vm505_vm10, %v658_v18, %v502_v23 }
 0x104   :  { %v511_v27 = vsel %vm508_vm11, %v510_v24, %v506_v25 }
 0x105   :  { %v518_v28 = vmul.f32 %v660_v26, %v511_v27 }
 0x107   :  { %555 = vmatmul.f32.vlgmr.msra.gmra.mxu0 %v518_v28  ;;  %560 = vst [vmem:[#allocation15] sm:$0xff] %v518_v28 }
 0x108   :  { %583 = dma.vmem_to_hbm [thread:$0]  %s579_s16, 128, %s581_s18, [#allocation16]  }
 0x109   :  { %594 = dma.vmem_to_hbm [thread:$0]  %s590_s1, 128, %s592_s3, [#allocation16]  }
 0x184   :  { %v556_v30 = vpop.f32.mrf.mxu0 }
 0x185   :  { %v557_v31 = vadd.f32 %v644_v29, %v556_v30 }
 0x187   :  { %559 = vst [vmem:[#allocation14] sm:$0xff] %v557_v31 }
 0x188   :  { %572 = dma.vmem_to_hbm [thread:$0]  %s568_s9, 128, %s570_s26, [#allocation5]  }
 0x189   :  { %873 = dma.done.wait [#allocation5], 128  }
 0x18a   :  { %874 = vsyncadd [#allocation5], 4294967168 }
 0x18b   :  { %875 = dma.done.wait [#allocation16], 256  }
 0x18c   :  { %876 = vsyncadd [#allocation16], 4294967040 }
 0x18d   :  { %607 = vsyncpa [#allocation4], 1 }
 0x18e   :  { %608 = vsyncpa [#allocation9], 1 }
 0x18f   :  { %609 = vsyncpa [#allocation12], 1 }
 0x190   :  { %610 = vsyncpa [#allocation5], 1 }
 0x191   :  { %611 = vsyncpa [#allocation16], 1 }
 0x192   :  { %612 = vsyncpa [#allocation6], 1 }

</bundles_post_ra>
